<compile_context>
chip_gen: v7x
topology: tpu7x:2x2x1
jax: 0.10.0
libtpu: 0.0.40
codegen_flags: <defaults>
</compile_context>

<pallas_src>
import functools

import jax
import jax.numpy as jnp
from jax.experimental import pallas as pl
from jax.experimental.pallas import tpu as pltpu


def _round_up(x: int, m: int) -> int:
    return ((x + m - 1) // m) * m


def _tensorcores_per_chip() -> int:
    """Best-effort: 2 TensorCores per chip on v7x, 1 on v5e/v6e."""
    try:
        kind = jax.devices()[0].device_kind.lower()
        if ("v7" in kind) or ("tpu7" in kind):
            return 2
    except Exception:
        pass
    return 1


def actor_kernel(x_ref, w1_ref, b1_ref, w2_ref, b2_ref, w3_ref, b3_ref, o_ref):
    """Fused 3-layer MLP (fc1+ReLU, fc2+ReLU, fc3+tanh) for one batch tile,
    entirely in VMEM.  All operands are f32 with f32 MXU accumulation; the
    bias broadcasts happen once (no inner loop)."""
    x = x_ref[...]                                                  # (tile, S)

    h1 = jnp.dot(x, w1_ref[...], preferred_element_type=jnp.float32)
    h1 = jnp.maximum(h1 + b1_ref[...], 0.0)

    h2 = jnp.dot(h1, w2_ref[...], preferred_element_type=jnp.float32)
    h2 = jnp.maximum(h2 + b2_ref[...], 0.0)

    out = jnp.dot(h2, w3_ref[...], preferred_element_type=jnp.float32)
    o_ref[...] = jnp.tanh(out + b3_ref[...])                        # (tile, Ap)


def _choose_tile(batch: int, cores: int) -> int:
    """Single grid step on 1-TC chips (v5e/v6e) unless the batch is huge;
    on v7x aim for >=2 steps per TensorCore so each core can still pipeline
    its x/out tile DMAs against compute."""
    if cores <= 1 or batch < 64:
        return batch if batch <= 4096 else 1024
    steps = 2 * cores                                   # >= 4 steps on v7x
    tile = max(8, _round_up(pl.cdiv(batch, steps), 8))
    return min(tile, 1024)


def prepare_actor_params(params, lane: int = 128):
    """One-time preprocessing (call once, outside the per-step path):
    biases reshaped to (1, H); fc3 output dim zero-padded to a lane-dense
    multiple of 128 so the kernel's output stores are full-lane."""
    W1, b1 = params["W1"], params["b1"]
    W2, b2 = params["W2"], params["b2"]
    W3, b3 = params["W3"], params["b3"]
    H2, A = W3.shape
    Ap = _round_up(A, lane)
    W3p = jnp.zeros((H2, Ap), jnp.float32).at[:, :A].set(W3.astype(jnp.float32))
    b3p = jnp.zeros((1, Ap), jnp.float32).at[0, :A].set(
        b3.reshape(-1).astype(jnp.float32))
    return {
        "W1": W1.astype(jnp.float32), "b1": b1.reshape(1, -1).astype(jnp.float32),
        "W2": W2.astype(jnp.float32), "b2": b2.reshape(1, -1).astype(jnp.float32),
        "W3": W3p, "b3": b3p,
    }


@functools.partial(jax.jit, static_argnames=("action_size", "cores"))
def _actor_forward_impl(state, prepped, *, action_size, cores):
    w1, b1 = prepped["W1"], prepped["b1"]
    w2, b2 = prepped["W2"], prepped["b2"]
    w3, b3 = prepped["W3"], prepped["b3"]

    B, S = state.shape
    H1 = w1.shape[1]
    H2 = w2.shape[1]
    Ap = w3.shape[1]                       # action dim padded to 128 lanes

    tile = _choose_tile(B, cores)
    Bp = _round_up(B, tile)
    x = state if Bp == B else jnp.pad(state, ((0, Bp - B), (0, 0)))
    grid = (Bp // tile,)

    # Grid-invariant operands: single-buffered (no double-buffer VMEM waste).
    def const_spec(shape):
        return pl.BlockSpec(shape, lambda i: (0, 0),
                            pipeline_mode=pl.Buffered(1))

    # VMEM budget: double-buffered x/out tiles + single-buffered f32 weights
    # + f32 temporaries, plus modest fixed headroom (actual footprint is only
    # a few MiB, so no 32/64 MiB clamps -- important on v7x's 64 MiB VMEM).
    w_bytes = 4 * (S * H1 + H1 * H2 + H2 * Ap + H1 + H2 + Ap)
    io_bytes = 2 * tile * 4 * (S + Ap)
    tmp_bytes = 4 * tile * (H1 + H2)
    vmem_limit = w_bytes + io_bytes + 2 * tmp_bytes + (16 << 20)

    flops = 2 * Bp * (S * H1 + H1 * H2 + H2 * Ap)
    bytes_accessed = 4 * Bp * (S + Ap) + w_bytes

    out = pl.pallas_call(
        actor_kernel,
        out_shape=jax.ShapeDtypeStruct((Bp, Ap), jnp.float32),
        grid_spec=pltpu.PrefetchScalarGridSpec(
            num_scalar_prefetch=0,
            grid=grid,
            in_specs=[
                pl.BlockSpec((tile, S), lambda i: (i, 0)),  # state tile
                const_spec((S, H1)),    # W1
                const_spec((1, H1)),    # b1
                const_spec((H1, H2)),   # W2
                const_spec((1, H2)),    # b2
                const_spec((H2, Ap)),   # W3 (output-lane padded)
                const_spec((1, Ap)),    # b3 (output-lane padded)
            ],
            out_specs=pl.BlockSpec((tile, Ap), lambda i: (i, 0)),
        ),
        compiler_params=pltpu.CompilerParams(
            dimension_semantics=("parallel",),
            vmem_limit_bytes=vmem_limit,
        ),
        cost_estimate=pl.CostEstimate(
            flops=flops, transcendentals=Bp * Ap,
            bytes_accessed=bytes_accessed),
    )(x, w1, b1, w2, b2, w3, b3)

    return out[:B, :action_size]


def actor_forward(state, prepped_params, *, action_size=4):
    """state: (B, state_size) float32; prepped_params from prepare_actor_params."""
    return _actor_forward_impl(state, prepped_params,
                               action_size=action_size,
                               cores=_tensorcores_per_chip())


def init_actor_params(key, state_size=33, action_size=4, hidden1=256,
                      hidden2=256):
    """PyTorch nn.Linear default init: U[-1/sqrt(fan_in), 1/sqrt(fan_in)]."""
    ks = jax.random.split(key, 6)

    def linear(kw, kb, fan_in, fan_out):
        bound = 1.0 / jnp.sqrt(float(fan_in))
        W = jax.random.uniform(kw, (fan_in, fan_out), jnp.float32, -bound, bound)
        b = jax.random.uniform(kb, (fan_out,), jnp.float32, -bound, bound)
        return W, b

    W1, b1 = linear(ks[0], ks[1], state_size, hidden1)
    W2, b2 = linear(ks[2], ks[3], hidden1, hidden2)
    W3, b3 = linear(ks[4], ks[5], hidden2, action_size)
    return {"W1": W1, "b1": b1, "W2": W2, "b2": b2, "W3": W3, "b3": b3}


def actor_reference(state, params):
    """Pure-JAX f32 reference for correctness check."""
    h1 = jnp.maximum(state @ params["W1"] + params["b1"], 0.0)
    h2 = jnp.maximum(h1 @ params["W2"] + params["b2"], 0.0)
    return jnp.tanh(h2 @ params["W3"] + params["b3"])


if __name__ == "__main__":
    key = jax.random.PRNGKey(0)
    k_params, k_state, k_state2 = jax.random.split(key, 3)

    state_size, action_size = 33, 4
    params = init_actor_params(k_params, state_size=state_size,
                               action_size=action_size)
    prepped = prepare_actor_params(params)   # one-time prep (padding/casts)

    # Small demo batch (single grid step, full-array blocks, no padding).
    batch = 8
    state = jax.random.normal(k_state, (batch, state_size), jnp.float32)
    out = jax.block_until_ready(actor_forward(state, prepped,
                                              action_size=action_size))
    ref = actor_reference(state, params)
    assert out.shape == (batch, action_size)
    assert jnp.allclose(out, ref, atol=3e-2, rtol=3e-2), "mismatch vs reference"

    # Larger batch exercising a different tile choice.
    batch2 = 200
    state2 = jax.random.normal(k_state2, (batch2, state_size), jnp.float32)
    out2 = jax.block_until_ready(actor_forward(state2, prepped,
                                               action_size=action_size))
    ref2 = actor_reference(state2, params)
    assert out2.shape == (batch2, action_size)
    assert jnp.allclose(out2, ref2, atol=3e-2, rtol=3e-2), "mismatch vs reference"

    print("KERNEL_OK")
</pallas_src>

<mosaic_0001>
module attributes {stable_mosaic.version = 11 : i64} {
  func.func @actor_kernel(%arg0: i32, %arg1: memref<8x33xf32, #tpu.memory_space<vmem>>, %arg2: memref<33x256xf32, #tpu.memory_space<vmem>>, %arg3: memref<1x256xf32, #tpu.memory_space<vmem>>, %arg4: memref<256x256xf32, #tpu.memory_space<vmem>>, %arg5: memref<1x256xf32, #tpu.memory_space<vmem>>, %arg6: memref<256x128xf32, #tpu.memory_space<vmem>>, %arg7: memref<1x128xf32, #tpu.memory_space<vmem>>, %arg8: memref<8x128xf32, #tpu.memory_space<vmem>>) attributes {dimension_semantics = [#tpu.dimension_semantics<parallel>], iteration_bounds = array<i64: 1>, scalar_prefetch = 0 : i64, scratch_operands = 0 : i64, tpu.core_type = #tpu.core_type<tc>, window_params = [{transform_indices = @transform_0, window_bounds = array<i64: 8, 33>}, {pipeline_mode = #tpu.pipeline_mode<synchronous>, transform_indices = @transform_1, window_bounds = array<i64: 33, 256>}, {pipeline_mode = #tpu.pipeline_mode<synchronous>, transform_indices = @transform_2, window_bounds = array<i64: 1, 256>}, {pipeline_mode = #tpu.pipeline_mode<synchronous>, transform_indices = @transform_3, window_bounds = array<i64: 256, 256>}, {pipeline_mode = #tpu.pipeline_mode<synchronous>, transform_indices = @transform_4, window_bounds = array<i64: 1, 256>}, {pipeline_mode = #tpu.pipeline_mode<synchronous>, transform_indices = @transform_5, window_bounds = array<i64: 256, 128>}, {pipeline_mode = #tpu.pipeline_mode<synchronous>, transform_indices = @transform_6, window_bounds = array<i64: 1, 128>}, {transform_indices = @transform_7, window_bounds = array<i64: 8, 128>}]} {
    %c0 = arith.constant 0 : index
    %c0_0 = arith.constant 0 : index
    %0 = vector.load %arg1[%c0, %c0_0] : memref<8x33xf32, #tpu.memory_space<vmem>>, vector<8x33xf32>
    %c0_1 = arith.constant 0 : index
    %c0_2 = arith.constant 0 : index
    %1 = vector.load %arg2[%c0_1, %c0_2] : memref<33x256xf32, #tpu.memory_space<vmem>>, vector<33x256xf32>
    %cst = arith.constant dense<0.000000e+00> : vector<8x256xf32>
    %2 = tpu.matmul %0, %1, %cst {dimension_numbers = #tpu.dot_dimension_numbers<[1], [0], [0], [1], [0, 0, 1, 1], [], []>} : vector<8x33xf32>, vector<33x256xf32>, vector<8x256xf32> -> vector<8x256xf32>
    %c0_3 = arith.constant 0 : index
    %c0_4 = arith.constant 0 : index
    %3 = vector.load %arg3[%c0_3, %c0_4] : memref<1x256xf32, #tpu.memory_space<vmem>>, vector<1x256xf32>
    %4 = vector.broadcast %3 : vector<1x256xf32> to vector<8x256xf32>
    %5 = arith.addf %2, %4 : vector<8x256xf32>
    %cst_5 = arith.constant 0.000000e+00 : f32
    %6 = vector.broadcast %cst_5 : f32 to vector<8x256xf32>
    %7 = arith.maximumf %5, %6 : vector<8x256xf32>
    %c0_6 = arith.constant 0 : index
    %c0_7 = arith.constant 0 : index
    %8 = vector.load %arg4[%c0_6, %c0_7] : memref<256x256xf32, #tpu.memory_space<vmem>>, vector<256x256xf32>
    %cst_8 = arith.constant dense<0.000000e+00> : vector<8x256xf32>
    %9 = tpu.matmul %7, %8, %cst_8 {dimension_numbers = #tpu.dot_dimension_numbers<[1], [0], [0], [1], [0, 0, 1, 1], [], []>} : vector<8x256xf32>, vector<256x256xf32>, vector<8x256xf32> -> vector<8x256xf32>
    %c0_9 = arith.constant 0 : index
    %c0_10 = arith.constant 0 : index
    %10 = vector.load %arg5[%c0_9, %c0_10] : memref<1x256xf32, #tpu.memory_space<vmem>>, vector<1x256xf32>
    %11 = vector.broadcast %10 : vector<1x256xf32> to vector<8x256xf32>
    %12 = arith.addf %9, %11 : vector<8x256xf32>
    %cst_11 = arith.constant 0.000000e+00 : f32
    %13 = vector.broadcast %cst_11 : f32 to vector<8x256xf32>
    %14 = arith.maximumf %12, %13 : vector<8x256xf32>
    %c0_12 = arith.constant 0 : index
    %c0_13 = arith.constant 0 : index
    %15 = vector.load %arg6[%c0_12, %c0_13] : memref<256x128xf32, #tpu.memory_space<vmem>>, vector<256x128xf32>
    %cst_14 = arith.constant dense<0.000000e+00> : vector<8x128xf32>
    %16 = tpu.matmul %14, %15, %cst_14 {dimension_numbers = #tpu.dot_dimension_numbers<[1], [0], [0], [1], [0, 0, 1, 1], [], []>} : vector<8x256xf32>, vector<256x128xf32>, vector<8x128xf32> -> vector<8x128xf32>
    %c0_15 = arith.constant 0 : index
    %c0_16 = arith.constant 0 : index
    %17 = vector.load %arg7[%c0_15, %c0_16] : memref<1x128xf32, #tpu.memory_space<vmem>>, vector<1x128xf32>
    %18 = vector.broadcast %17 : vector<1x128xf32> to vector<8x128xf32>
    %19 = arith.addf %16, %18 : vector<8x128xf32>
    %20 = math.tanh %19 : vector<8x128xf32>
    %c0_17 = arith.constant 0 : index
    %c0_18 = arith.constant 0 : index
    %21 = vector.load %arg8[%c0_17, %c0_18] : memref<8x128xf32, #tpu.memory_space<vmem>>, vector<8x128xf32>
    tpu.vector_store %arg8[%c0_17, %c0_18], %20 {strides = array<i32>} : memref<8x128xf32, #tpu.memory_space<vmem>>, vector<8x128xf32>,
    return
  }
  func.func @transform_0(%arg0: i32) -> (i32, i32) {
    %c0_i32 = arith.constant 0 : i32
    %c0_i32_0 = arith.constant 0 : i32
    return %arg0, %c0_i32 : i32, i32
  }
  func.func @transform_1(%arg0: i32) -> (i32, i32) {
    %c0_i32 = arith.constant 0 : i32
    %c0_i32_0 = arith.constant 0 : i32
    %c0_i32_1 = arith.constant 0 : i32
    return %c0_i32, %c0_i32_0 : i32, i32
  }
  func.func @transform_2(%arg0: i32) -> (i32, i32) {
    %c0_i32 = arith.constant 0 : i32
    %c0_i32_0 = arith.constant 0 : i32
    %c0_i32_1 = arith.constant 0 : i32
    return %c0_i32, %c0_i32_0 : i32, i32
  }
  func.func @transform_3(%arg0: i32) -> (i32, i32) {
    %c0_i32 = arith.constant 0 : i32
    %c0_i32_0 = arith.constant 0 : i32
    %c0_i32_1 = arith.constant 0 : i32
    return %c0_i32, %c0_i32_0 : i32, i32
  }
  func.func @transform_4(%arg0: i32) -> (i32, i32) {
    %c0_i32 = arith.constant 0 : i32
    %c0_i32_0 = arith.constant 0 : i32
    %c0_i32_1 = arith.constant 0 : i32
    return %c0_i32, %c0_i32_0 : i32, i32
  }
  func.func @transform_5(%arg0: i32) -> (i32, i32) {
    %c0_i32 = arith.constant 0 : i32
    %c0_i32_0 = arith.constant 0 : i32
    %c0_i32_1 = arith.constant 0 : i32
    return %c0_i32, %c0_i32_0 : i32, i32
  }
  func.func @transform_6(%arg0: i32) -> (i32, i32) {
    %c0_i32 = arith.constant 0 : i32
    %c0_i32_0 = arith.constant 0 : i32
    %c0_i32_1 = arith.constant 0 : i32
    return %c0_i32, %c0_i32_0 : i32, i32
  }
  func.func @transform_7(%arg0: i32) -> (i32, i32) {
    %c0_i32 = arith.constant 0 : i32
    %c0_i32_0 = arith.constant 0 : i32
    return %arg0, %c0_i32 : i32, i32
  }
}

</mosaic_0001>

<bundles_post_ra>
// kernel: _actor_forward_impl.1
= control target key start
LH: loop header
LB: loop body
LE: loop exit
PB: predicated region body
PF: predicated region fallthrough
CT: control target
= control target key end

     0   :  { %12 = vsyncpa [#allocation3], 0  ;;  %s818_s0 = inlined_call_operand.hbm [shape: f32[8,33], index: 0, kind: input, shape index: {}]   ;;  %s819_s1 = inlined_call_operand.hbm [shape: f32[33,256], index: 1, kind: input, shape index: {}]   ;;  %s820_s2 = inlined_call_operand.vmem [shape: f32[1,256], index: 2, kind: input, shape index: {}]   ;;  %s821_s3 = inlined_call_operand.hbm [shape: f32[256,256], index: 3, kind: input, shape index: {}]   ;;  %s822_s4 = inlined_call_operand.vmem [shape: f32[1,256], index: 4, kind: input, shape index: {}]   ;;  %s823_s5 = inlined_call_operand.hbm [shape: f32[256,128], index: 5, kind: input, shape index: {}]   ;;  %s824_s6 = inlined_call_operand.vmem [shape: f32[1,128], index: 6, kind: input, shape index: {}]   ;;  %s825_s7 = inlined_call_operand.vmem [shape: f32[8,128], index: 7, kind: output, shape index: {}]  }
   0x1   :  { %13 = vsyncpa [#allocation5], 0 }
   0x2   :  { %14 = vsyncpa [#allocation8], 0  ;;  %s701_s24 = smov [#allocation4]   ;;  %s607_s28 = scalar_lea.hbm %s819_s1, 1280 }
   0x3   :  { %s30_s25 = sshll.u32 %s701_s24, 4  ;;  %p608_p0 = scmp.ne.s32.totalorder %s819_s1, %s607_s28  ;;  %s31_s25 = int_to_ptr.vmem [resolvable:$true] %s30_s25 }
   0x4   :  { %p611_p1 = scmp.lt.u32.totalorder %s607_s28, %s819_s1 }
   0x6   :  { %p613_p2 = pnand %p611_p1, %p608_p0 }
   0x8   :  { %616 = shalt.err (!%p613_p2)
}
   0x9   :  { %s617_s10 = scalar_lea.vmem %s31_s25, 1280  ;;  %p622_p4 = scmp.lt.s32.totalorder %s31_s25, %s31_s25 }
   0xa   :  { %p618_p3 = scmp.ne.s32.totalorder %s31_s25, %s617_s10  ;;  %p623_p5 = scmp.lt.s32.totalorder %s617_s10, %s617_s10 }
   0xc   :  { %p624_p6 = por %p623_p5, %p622_p4 }
   0xe   :  { %p625_p7 = pnand %p624_p6, %p618_p3 }
  0x10   :  { %628 = shalt.err (!%p625_p7)
}
  0x11   :  { %s702_s11 = smov 256   ;;  %s703_s12 = smov 16  }
  0x12   :  { %36 = dma.hbm_to_vmem [thread:$0]  %s819_s1, 1280, %s31_s25, [#allocation5], %s702_s11, %s702_s11, %s703_s12  }
  0x13   :  { %s704_s15 = smov [#allocation2]   ;;  %s705_s17 = smov [#allocation6]  }
  0x14   :  { %s21_s16 = sshll.u32 %s704_s15, 4  ;;  %s44_s18 = sshll.u32 %s705_s17, 4  ;;  %s22_s16 = int_to_ptr.vmem [resolvable:$true] %s21_s16  ;;  %s45_s18 = int_to_ptr.vmem [resolvable:$true] %s44_s18 }
  0x15   :  { %s629_s21 = scalar_lea.hbm %s818_s0, 128 }
  0x16   :  { %p630_p8 = scmp.ne.s32.totalorder %s818_s0, %s629_s21  ;;  %p633_p9 = scmp.lt.u32.totalorder %s629_s21, %s818_s0 }
  0x18   :  { %p635_p10 = pnand %p633_p9, %p630_p8 }
  0x1a   :  { %638 = shalt.err (!%p635_p10)
}
  0x1b   :  { %s639_s1 = scalar_lea.vmem %s22_s16, 128  ;;  %p644_p12 = scmp.lt.s32.totalorder %s22_s16, %s22_s16 }
  0x1c   :  { %p640_p11 = scmp.ne.s32.totalorder %s22_s16, %s639_s1  ;;  %p645_p13 = scmp.lt.s32.totalorder %s639_s1, %s639_s1 }
  0x1e   :  { %p646_p0 = por %p645_p13, %p644_p12 }
  0x20   :  { %p647_p1 = pnand %p646_p0, %p640_p11 }
  0x22   :  { %650 = shalt.err (!%p647_p1)
}
  0x23   :  { %24 = dma.hbm_to_vmem [thread:$0]  %s818_s0, 128, %s22_s16, [#allocation3]  }
  0x24   :  { %s651_s30 = scalar_lea.hbm %s821_s3, 8192 }
  0x25   :  { %p652_p2 = scmp.ne.s32.totalorder %s821_s3, %s651_s30  ;;  %p655_p3 = scmp.lt.u32.totalorder %s651_s30, %s821_s3 }
  0x27   :  { %p657_p4 = pnand %p655_p3, %p652_p2 }
  0x29   :  { %660 = shalt.err (!%p657_p4)
}
  0x2a   :  { %s661_s14 = scalar_lea.vmem %s45_s18, 8192  ;;  %p666_p6 = scmp.lt.s32.totalorder %s45_s18, %s45_s18 }
  0x2b   :  { %p662_p5 = scmp.ne.s32.totalorder %s45_s18, %s661_s14  ;;  %p667_p7 = scmp.lt.s32.totalorder %s661_s14, %s661_s14 }
  0x2d   :  { %p668_p8 = por %p667_p7, %p666_p6 }
  0x2f   :  { %p669_p9 = pnand %p668_p8, %p662_p5 }
  0x31   :  { %672 = shalt.err (!%p669_p9)
}
  0x32   :  { %50 = dma.hbm_to_vmem [thread:$0]  %s821_s3, 8192, %s45_s18, [#allocation5], %s702_s11, %s702_s11, %s703_s12  }
  0x33   :  { %s706_s16 = smov [#allocation7]   ;;  %s673_s21 = scalar_lea.hbm %s823_s5, 4096 }
  0x34   :  { %s58_s17 = sshll.u32 %s706_s16, 4  ;;  %p674_p10 = scmp.ne.s32.totalorder %s823_s5, %s673_s21  ;;  %s59_s17 = int_to_ptr.vmem [resolvable:$true] %s58_s17 }
  0x35   :  { %p677_p11 = scmp.lt.u32.totalorder %s673_s21, %s823_s5 }
  0x37   :  { %p679_p12 = pnand %p677_p11, %p674_p10 }
  0x39   :  { %682 = shalt.err (!%p679_p12)
}
  0x3a   :  { %s683_s1 = scalar_lea.vmem %s59_s17, 4096  ;;  %p688_p0 = scmp.lt.s32.totalorder %s59_s17, %s59_s17 }
  0x3b   :  { %p684_p13 = scmp.ne.s32.totalorder %s59_s17, %s683_s1  ;;  %p689_p1 = scmp.lt.s32.totalorder %s683_s1, %s683_s1 }
  0x3d   :  { %p690_p2 = por %p689_p1, %p688_p0 }
  0x3f   :  { %p691_p3 = pnand %p690_p2, %p684_p13 }
  0x41   :  { %694 = shalt.err (!%p691_p3)
}
  0x42   :  { %s707_s3 = smov 128   ;;  %s708_s11 = smov 8  }
  0x43   :  { %64 = dma.hbm_to_vmem [thread:$0]  %s823_s5, 4096, %s59_s17, [#allocation8], %s707_s3, %s707_s3, %s708_s11  }
  0x44   :  { %695 = dma.done.wait [#allocation3], 128  }
  0x45   :  { %696 = vsyncadd [#allocation3], 4294967168 }
  0x46   :  { %697 = dma.done.wait [#allocation5], 9472  }
  0x47   :  { %698 = vsyncadd [#allocation5], 4294957824 }
  0x48   :  { %699 = dma.done.wait [#allocation8], 4096  }
  0x49   :  { %700 = vsyncadd [#allocation8], 4294963200  ;;  %v709_v0 = vmov 0.0   ;;  %v81_v1 = vld [vmem:[#allocation4 + $0x8] sm:$0xff]  ;;  %v83_v2 = vld [vmem:[#allocation4 + $0x18] sm:$0xff]  ;;  %vm106_vm0 = vcmask 1040384  }
  0x4a   :  { %177 = vmatprep.mubr.f32.mxu0 %v709_v0  ;;  %v80_v3 = vld [vmem:[#allocation4] sm:$0xff]  ;;  %v492_v4 = vpack.c.bf16 %v83_v2, %v81_v1  ;;  %v82_v5 = vld [vmem:[#allocation4 + $0x10] sm:$0xff]  ;;  %v85_v6 = vld [vmem:[#allocation4 + $0x28] sm:$0xff]  ;;  %vm102_vm1 = vcmask 269312  }
  0x4b   :  { %v87_v7 = vld [vmem:[#allocation4 + $0x38] sm:$0xff]  ;;  %v494_v8 = vpack.c.bf16 %v82_v5, %v80_v3  ;;  %v84_v10 = vld [vmem:[#allocation4 + $0x20] sm:$0xff]  ;;  %v86_v11 = vld [vmem:[#allocation4 + $0x30] sm:$0xff] }
  0x4c   :  { %v496_v9 = vpack.c.bf16 %v87_v7, %v85_v6  ;;  %493 = vmatprep.subr.bf16.mxu0 %v492_v4  ;;  %v187_v12 = vld [vmem:[#allocation6 + $0x8] sm:$0xff]  ;;  %v498_v13 = vpack.c.bf16 %v86_v11, %v84_v10  ;;  %v89_v14 = vld [vmem:[#allocation4 + $0x48] sm:$0x1]  ;;  %v186_v16 = vld [vmem:[#allocation6] sm:$0xff] }
  0x4d   :  { %495 = vmatpush1.bf16.msra.mxu0 %v494_v8  ;;  %v189_v15 = vld [vmem:[#allocation6 + $0x18] sm:$0xff]  ;;  %v188_v17 = vld [vmem:[#allocation6 + $0x10] sm:$0xff]  ;;  %v191_v20 = vld [vmem:[#allocation6 + $0x28] sm:$0xff] }
  0x4e   :  { %497 = vmatprep.subr.bf16.mxu0 %v496_v9  ;;  %v500_v18 = vpack.c.bf16 %v189_v15, %v187_v12  ;;  %v502_v19 = vpack.c.bf16 %v188_v17, %v186_v16  ;;  %v193_v21 = vld [vmem:[#allocation6 + $0x38] sm:$0xff]  ;;  %v190_v22 = vld [vmem:[#allocation6 + $0x20] sm:$0xff]  ;;  %v192_v24 = vld [vmem:[#allocation6 + $0x30] sm:$0xff] }
  0x4f   :  { %v504_v23 = vpack.c.bf16 %v193_v21, %v191_v20  ;;  %v195_v25 = vld [vmem:[#allocation6 + $0x48] sm:$0xff]  ;;  %v197_v26 = vld [vmem:[#allocation6 + $0x58] sm:$0xff]  ;;  %v506_v27 = vpack.c.bf16 %v192_v24, %v190_v22  ;;  %v88_v28 = vld [vmem:[#allocation4 + $0x40] sm:$0x1] }
  0x50   :  { %501 = vmatprep.subr.bf16.mxu1 %v500_v18  ;;  %v508_v29 = vpack.c.bf16 %v197_v26, %v195_v25  ;;  %v194_v30 = vld [vmem:[#allocation6 + $0x40] sm:$0xff]  ;;  %v196_v31 = vld [vmem:[#allocation6 + $0x50] sm:$0xff]  ;;  %v79_v32 = vld [vmem:[#allocation2] sm:$0xff] }
  0x51   :  { %499 = vmatpush1.bf16.msra.mxu0 %v498_v13  ;;  %503 = vmatpush1.bf16.msra.mxu1 %v502_v19  ;;  %v199_v33 = vld [vmem:[#allocation6 + $0x68] sm:$0xff]  ;;  %v201_v34 = vld [vmem:[#allocation6 + $0x78] sm:$0xff]  ;;  %v510_v35 = vpack.c.bf16 %v196_v31, %v194_v30  ;;  %v198_v37 = vld [vmem:[#allocation6 + $0x60] sm:$0xff] }
  0x52   :  { %453 = vmatprep.subr.msk.mxu0 %vm106_vm0, %v89_v14  ;;  %505 = vmatprep.subr.bf16.mxu1 %v504_v23  ;;  %v512_v36 = vpack.c.bf16 %v201_v34, %v199_v33  ;;  %v200_v38 = vld [vmem:[#allocation6 + $0x70] sm:$0xff]  ;;  %v203_v39 = vld [vmem:[#allocation6 + $0x88] sm:$0xff]  ;;  %v205_v40 = vld [vmem:[#allocation6 + $0x98] sm:$0xff] }
  0x53   :  { %v514_v41 = vpack.c.bf16 %v200_v38, %v198_v37  ;;  %v516_v42 = vpack.c.bf16 %v205_v40, %v203_v39  ;;  %v202_v43 = vld [vmem:[#allocation6 + $0x80] sm:$0xff]  ;;  %v204_v44 = vld [vmem:[#allocation6 + $0x90] sm:$0xff]  ;;  %v207_v45 = vld [vmem:[#allocation6 + $0xa8] sm:$0xff] }
  0x54   :  { %v209_v46 = vld [vmem:[#allocation6 + $0xb8] sm:$0xff]  ;;  %v518_v47 = vpack.c.bf16 %v204_v44, %v202_v43  ;;  %v206_v49 = vld [vmem:[#allocation6 + $0xa0] sm:$0xff]  ;;  %v208_v50 = vld [vmem:[#allocation6 + $0xb0] sm:$0xff] }
  0x55   :  { %454 = vmatpush1.msk.msra.mxu0 %vm106_vm0, %v88_v28  ;;  %507 = vmatpush1.bf16.msra.mxu1 %v506_v27  ;;  %v520_v48 = vpack.c.bf16 %v209_v46, %v207_v45  ;;  %v211_v51 = vld [vmem:[#allocation6 + $0xc8] sm:$0xff]  ;;  %v213_v52 = vld [vmem:[#allocation6 + $0xd8] sm:$0xff]  ;;  %v522_v53 = vpack.c.bf16 %v208_v50, %v206_v49  ;;  %v210_v55 = vld [vmem:[#allocation6 + $0xc0] sm:$0xff] }
  0x56   :  { %455 = vmatmul.mubr.msk.f32.vlgmr.msra.gmra.mrb[0].mxu0 %vm102_vm1, %v79_v32  ;;  %509 = vmatprep.subr.bf16.mxu1 %v508_v29  ;;  %v524_v54 = vpack.c.bf16 %v213_v52, %v211_v51  ;;  %v212_v56 = vld [vmem:[#allocation6 + $0xd0] sm:$0xff]  ;;  %v215_v57 = vld [vmem:[#allocation6 + $0xe8] sm:$0xff]  ;;  %v217_v58 = vld [vmem:[#allocation6 + $0xf8] sm:$0xff] }
  0x57   :  { %v526_v59 = vpack.c.bf16 %v212_v56, %v210_v55  ;;  %v528_v60 = vpack.c.bf16 %v217_v58, %v215_v57  ;;  %v214_v61 = vld [vmem:[#allocation6 + $0xe0] sm:$0xff]  ;;  %v216_v62 = vld [vmem:[#allocation6 + $0xf0] sm:$0xff]  ;;  %v219_v63 = vld [vmem:[#allocation6 + $0x108] sm:$0xff] }
  0x58   :  { %v221_v0 = vld [vmem:[#allocation6 + $0x118] sm:$0xff]  ;;  %v530_v1 = vpack.c.bf16 %v216_v62, %v214_v61  ;;  %v218_v3 = vld [vmem:[#allocation6 + $0x100] sm:$0xff]  ;;  %v220_v4 = vld [vmem:[#allocation6 + $0x110] sm:$0xff] }
  0x59   :  { %511 = vmatpush1.bf16.msra.mxu1 %v510_v35  ;;  %v532_v2 = vpack.c.bf16 %v221_v0, %v219_v63  ;;  %v223_v5 = vld [vmem:[#allocation6 + $0x128] sm:$0xff]  ;;  %v225_v6 = vld [vmem:[#allocation6 + $0x138] sm:$0xff]  ;;  %v534_v7 = vpack.c.bf16 %v220_v4, %v218_v3  ;;  %v222_v9 = vld [vmem:[#allocation6 + $0x120] sm:$0xff] }
  0x5a   :  { %513 = vmatprep.subr.bf16.mxu1 %v512_v36  ;;  %v536_v8 = vpack.c.bf16 %v225_v6, %v223_v5  ;;  %v224_v10 = vld [vmem:[#allocation6 + $0x130] sm:$0xff]  ;;  %v227_v11 = vld [vmem:[#allocation6 + $0x148] sm:$0xff]  ;;  %v229_v12 = vld [vmem:[#allocation6 + $0x158] sm:$0xff] }
  0x5b   :  { %v538_v13 = vpack.c.bf16 %v224_v10, %v222_v9  ;;  %v540_v14 = vpack.c.bf16 %v229_v12, %v227_v11  ;;  %v226_v15 = vld [vmem:[#allocation6 + $0x140] sm:$0xff]  ;;  %v228_v16 = vld [vmem:[#allocation6 + $0x150] sm:$0xff]  ;;  %v231_v17 = vld [vmem:[#allocation6 + $0x168] sm:$0xff] }
  0x5c   :  { %v233_v18 = vld [vmem:[#allocation6 + $0x178] sm:$0xff]  ;;  %v542_v19 = vpack.c.bf16 %v228_v16, %v226_v15  ;;  %v230_v21 = vld [vmem:[#allocation6 + $0x160] sm:$0xff]  ;;  %v232_v22 = vld [vmem:[#allocation6 + $0x170] sm:$0xff] }
  0x5d   :  { %515 = vmatpush1.bf16.msra.mxu1 %v514_v41  ;;  %v544_v20 = vpack.c.bf16 %v233_v18, %v231_v17  ;;  %v235_v23 = vld [vmem:[#allocation6 + $0x188] sm:$0xff]  ;;  %v237_v24 = vld [vmem:[#allocation6 + $0x198] sm:$0xff]  ;;  %v546_v25 = vpack.c.bf16 %v232_v22, %v230_v21  ;;  %v234_v27 = vld [vmem:[#allocation6 + $0x180] sm:$0xff] }
  0x5e   :  { %517 = vmatprep.subr.bf16.mxu1 %v516_v42  ;;  %v548_v26 = vpack.c.bf16 %v237_v24, %v235_v23  ;;  %v236_v28 = vld [vmem:[#allocation6 + $0x190] sm:$0xff]  ;;  %v239_v29 = vld [vmem:[#allocation6 + $0x1a8] sm:$0xff]  ;;  %v241_v30 = vld [vmem:[#allocation6 + $0x1b8] sm:$0xff]  ;;  %v92_v23 = vlaneseq }
  0x5f   :  { %v550_v31 = vpack.c.bf16 %v236_v28, %v234_v27  ;;  %v552_v32 = vpack.c.bf16 %v241_v30, %v239_v29  ;;  %v238_v33 = vld [vmem:[#allocation6 + $0x1a0] sm:$0xff]  ;;  %v240_v34 = vld [vmem:[#allocation6 + $0x1b0] sm:$0xff]  ;;  %v243_v35 = vld [vmem:[#allocation6 + $0x1c8] sm:$0xff] }
  0x60   :  { %v245_v36 = vld [vmem:[#allocation6 + $0x1d8] sm:$0xff]  ;;  %v554_v37 = vpack.c.bf16 %v240_v34, %v238_v33  ;;  %v242_v39 = vld [vmem:[#allocation6 + $0x1c0] sm:$0xff]  ;;  %v244_v40 = vld [vmem:[#allocation6 + $0x1d0] sm:$0xff]  ;;  %v93_v24 = vshrl.u32 %v92_v23, 7 }
  0x61   :  { %519 = vmatpush1.bf16.msra.mxu1 %v518_v47  ;;  %v556_v38 = vpack.c.bf16 %v245_v36, %v243_v35  ;;  %v558_v41 = vpack.c.bf16 %v244_v40, %v242_v39  ;;  %v247_v42 = vld [vmem:[#allocation6 + $0x1e8] sm:$0xff]  ;;  %v249_v43 = vld [vmem:[#allocation6 + $0x1f8] sm:$0xff]  ;;  %v246_v45 = vld [vmem:[#allocation6 + $0x1e0] sm:$0xff] }
  0x62   :  { %521 = vmatprep.subr.bf16.mxu1 %v520_v48  ;;  %v560_v44 = vpack.c.bf16 %v249_v43, %v247_v42  ;;  %v248_v46 = vld [vmem:[#allocation6 + $0x1f0] sm:$0xff]  ;;  %v351_v48 = vld [vmem:[#allocation7 + $0x80] sm:$0xff]  ;;  %v352_v49 = vld [vmem:[#allocation7 + $0x88] sm:$0xff]  ;;  %v98_v27 = vsub.s32 1, %v93_v24 }
  0x63   :  { %v562_v47 = vpack.c.bf16 %v248_v46, %v246_v45  ;;  %v335_v50 = vld [vmem:[#allocation7] sm:$0xff]  ;;  %v564_v51 = vpack.c.bf16 %v352_v49, %v351_v48  ;;  %v336_v52 = vld [vmem:[#allocation7 + $0x8] sm:$0xff]  ;;  %v337_v57 = vld [vmem:[#allocation7 + $0x10] sm:$0xff] }
  0x64   :  { %v566_v55 = vpack.c.bf16 %v336_v52, %v335_v50  ;;  %v338_v58 = vld [vmem:[#allocation7 + $0x18] sm:$0xff]  ;;  %v339_v63 = vld [vmem:[#allocation7 + $0x20] sm:$0xff]  ;;  %v340_v0 = vld [vmem:[#allocation7 + $0x28] sm:$0xff] }
  0x65   :  { %523 = vmatpush1.bf16.msra.mxu1 %v522_v53  ;;  %v353_v53 = vld [vmem:[#allocation7 + $0x90] sm:$0xff]  ;;  %565 = vmatprep.subr.bf16.mxu0 %v564_v51  ;;  %v570_v61 = vpack.c.bf16 %v338_v58, %v337_v57  ;;  %v574_v3 = vpack.c.bf16 %v340_v0, %v339_v63  ;;  %v342_v6 = vld [vmem:[#allocation7 + $0x38] sm:$0xff]  ;;  %v343_v11 = vld [vmem:[#allocation7 + $0x40] sm:$0xff] }
  0x66   :  { %525 = vmatprep.subr.bf16.mxu1 %v524_v54  ;;  %v354_v54 = vld [vmem:[#allocation7 + $0x98] sm:$0xff]  ;;  %567 = vmatpush3.bf16.msra.mxu0 %v566_v55  ;;  %v341_v5 = vld [vmem:[#allocation7 + $0x30] sm:$0xff]  ;;  %v344_v12 = vld [vmem:[#allocation7 + $0x48] sm:$0xff] }
  0x67   :  { %v568_v56 = vpack.c.bf16 %v354_v54, %v353_v53  ;;  %v578_v9 = vpack.c.bf16 %v342_v6, %v341_v5  ;;  %v582_v15 = vpack.c.bf16 %v344_v12, %v343_v11  ;;  %v345_v17 = vld [vmem:[#allocation7 + $0x50] sm:$0xff]  ;;  %v346_v18 = vld [vmem:[#allocation7 + $0x58] sm:$0xff]  ;;  %v347_v36 = vld [vmem:[#allocation7 + $0x60] sm:$0xff] }
  0x68   :  { %v586_v21 = vpack.c.bf16 %v346_v18, %v345_v17  ;;  %v365_v39 = vld [vmem:[#allocation7 + $0xf0] sm:$0xff]  ;;  %v366_v40 = vld [vmem:[#allocation7 + $0xf8] sm:$0xff]  ;;  %v250_v45 = vld [vmem:[%s822_s4] sm:$0x3] }
  0x69   :  { %527 = vmatpush1.bf16.msra.mxu1 %v526_v59  ;;  %v355_v59 = vld [vmem:[#allocation7 + $0xa0] sm:$0xff]  ;;  %569 = vmatprep.subr.bf16.mxu0 %v568_v56  ;;  %v349_v42 = vld [vmem:[#allocation7 + $0x70] sm:$0xff]  ;;  %v350_v43 = vld [vmem:[#allocation7 + $0x78] sm:$0xff] }
  0x6a   :  { %529 = vmatprep.subr.bf16.mxu1 %v528_v60  ;;  %v356_v60 = vld [vmem:[#allocation7 + $0xa8] sm:$0xff]  ;;  %571 = vmatpush3.bf16.msra.mxu0 %v570_v61 }
  0x6b   :  { %v572_v62 = vpack.c.bf16 %v356_v60, %v355_v59  ;;  %v456_v55 = vld [vmem:[%s824_s6] ss:$0 sm:$0xff] }
  0x6d   :  { %531 = vmatpush1.bf16.msra.mxu1 %v530_v1  ;;  %v357_v1 = vld [vmem:[#allocation7 + $0xb0] sm:$0xff]  ;;  %573 = vmatprep.subr.bf16.mxu0 %v572_v62 }
  0x6e   :  { %533 = vmatprep.subr.bf16.mxu1 %v532_v2  ;;  %v358_v2 = vld [vmem:[#allocation7 + $0xb8] sm:$0xff]  ;;  %575 = vmatpush3.bf16.msra.mxu0 %v574_v3 }
  0x6f   :  { %v576_v4 = vpack.c.bf16 %v358_v2, %v357_v1 }
  0x71   :  { %535 = vmatpush1.bf16.msra.mxu1 %v534_v7  ;;  %v359_v7 = vld [vmem:[#allocation7 + $0xc0] sm:$0xff]  ;;  %577 = vmatprep.subr.bf16.mxu0 %v576_v4 }
  0x72   :  { %537 = vmatprep.subr.bf16.mxu1 %v536_v8  ;;  %v360_v8 = vld [vmem:[#allocation7 + $0xc8] sm:$0xff]  ;;  %579 = vmatpush3.bf16.msra.mxu0 %v578_v9 }
  0x73   :  { %v580_v10 = vpack.c.bf16 %v360_v8, %v359_v7 }
  0x75   :  { %539 = vmatpush1.bf16.msra.mxu1 %v538_v13  ;;  %v361_v13 = vld [vmem:[#allocation7 + $0xd0] sm:$0xff]  ;;  %581 = vmatprep.subr.bf16.mxu0 %v580_v10 }
  0x76   :  { %541 = vmatprep.subr.bf16.mxu1 %v540_v14  ;;  %v362_v14 = vld [vmem:[#allocation7 + $0xd8] sm:$0xff]  ;;  %583 = vmatpush3.bf16.msra.mxu0 %v582_v15 }
  0x77   :  { %v584_v16 = vpack.c.bf16 %v362_v14, %v361_v13 }
  0x79   :  { %543 = vmatpush1.bf16.msra.mxu1 %v542_v19  ;;  %v363_v19 = vld [vmem:[#allocation7 + $0xe0] sm:$0xff]  ;;  %585 = vmatprep.subr.bf16.mxu0 %v584_v16 }
  0x7a   :  { %545 = vmatprep.subr.bf16.mxu1 %v544_v20  ;;  %v364_v20 = vld [vmem:[#allocation7 + $0xe8] sm:$0xff]  ;;  %587 = vmatpush3.bf16.msra.mxu0 %v586_v21 }
  0x7b   :  { %v588_v22 = vpack.c.bf16 %v364_v20, %v363_v19 }
  0x7d   :  { %547 = vmatpush1.bf16.msra.mxu1 %v546_v25  ;;  %589 = vmatprep.subr.bf16.mxu0 %v588_v22  ;;  %v94_v25 = vsub.s32 0, %v93_v24 }
  0x7e   :  { %549 = vmatprep.subr.bf16.mxu1 %v548_v26  ;;  %v90_v26 = vld [vmem:[%s820_s2] sm:$0x3] }
  0x7f   :  { %v95_v28 = vrot.slane %v90_v26, %v94_v25  ;;  %v99_v29 = vrot.slane %v90_v26, %v98_v27  ;;  %v255_v46 = vrot.slane %v250_v45, %v94_v25 }
  0x81   :  { %551 = vmatpush1.bf16.msra.mxu1 %v550_v31 }
  0x82   :  { %553 = vmatprep.subr.bf16.mxu1 %v552_v32 }
  0x85   :  { %555 = vmatpush1.bf16.msra.mxu1 %v554_v37  ;;  %v348_v37 = vld [vmem:[#allocation7 + $0x68] sm:$0xff] }
  0x86   :  { %557 = vmatprep.subr.bf16.mxu1 %v556_v38  ;;  %v590_v38 = vpack.c.bf16 %v348_v37, %v347_v36 }
  0x88   :  { %591 = vmatpush3.bf16.msra.mxu0 %v590_v38 }
  0x89   :  { %559 = vmatpush1.bf16.msra.mxu1 %v558_v41  ;;  %v592_v41 = vpack.c.bf16 %v366_v40, %v365_v39 }
  0x8a   :  { %561 = vmatprep.subr.bf16.mxu1 %v560_v44  ;;  %v594_v44 = vpack.c.bf16 %v350_v43, %v349_v42 }
  0x8b   :  { %593 = vmatprep.subr.bf16.mxu0 %v592_v41 }
  0x8c   :  { %595 = vmatpush3.bf16.msra.mxu0 %v594_v44 }
  0x8d   :  { %563 = vmatpush1.bf16.msra.mxu1 %v562_v47  ;;  %v259_v47 = vrot.slane %v250_v45, %v98_v27 }
 0x129   :  { %v179_v30 = vpop.f32.mrb[0].mxu0 }
 0x12a   :  { %v180_v31 = vadd.f32 %v179_v30, %v95_v28  ;;  %v181_v32 = vpop.f32.mrb[1].mxu0 }
 0x12b   :  { %v182_v33 = vadd.f32 %v181_v32, %v99_v29 }
 0x12c   :  { %v184_v35 = vmax.f32 %v180_v31, 0.0 }
 0x12d   :  { %v185_v34 = vmax.f32 %v182_v33, 0.0 }
 0x12f   :  { %326 = vmatprep.mubr.f32.mxu1 %v185_v34 }
 0x130   :  { %327 = vmatmul.mubr.f32.vlgmr.msra.gmra.mrb[0].mxu1 %v184_v35 }
 0x203   :  { %v328_v48 = vpop.f32.mrb[0].mxu1 }
 0x204   :  { %v329_v49 = vadd.f32 %v328_v48, %v255_v46  ;;  %v330_v50 = vpop.f32.mrb[1].mxu1 }
 0x205   :  { %v331_v51 = vadd.f32 %v330_v50, %v259_v47 }
 0x206   :  { %v333_v53 = vmax.f32 %v329_v49, 0.0 }
 0x207   :  { %v334_v52 = vmax.f32 %v331_v51, 0.0 }
 0x209   :  { %438 = vmatprep.mubr.f32.mxu0 %v334_v52 }
 0x20a   :  { %439 = vmatmul.mubr.f32.vlgmr.msra.gmra.mrb[2].mxu0 %v333_v53 }
 0x2dd   :  { %v489_v54 = vpop.f32.mrb[2].mxu0 }
 0x2de   :  { %v490_v56 = vpop.f32.mrb[3].mxu0 }
 0x2df   :  { %v491_v57 = vadd.f32 %v490_v56, %v489_v54 }
 0x2e1   :  { %v441_v58 = vadd.f32 %v491_v57, %v456_v55 }
 0x2e3   :  { %605 = vtanh.f32 %v441_v58 }
 0x2ed   :  { %v606_v59 = vpop.eup %605 }
 0x2ee   :  { %445 = vst [vmem:[%s825_s7] sm:$0xff] %v606_v59 }
 0x2ef   :  { %450 = vsyncpa [#allocation3], 1 }
 0x2f0   :  { %451 = vsyncpa [#allocation5], 1 }
 0x2f1   :  { %452 = vsyncpa [#allocation8], 1 }

</bundles_post_ra>
